<compile_context>
chip_gen: v7x
topology: tpu7x:2x2x1
jax: 0.10.0
libtpu: 0.0.40
codegen_flags: <defaults>
</compile_context>

<pallas_src>
import jax
import jax.numpy as jnp
from jax.experimental import pallas as pl
from jax.experimental.pallas import tpu as pltpu

_LANE = 128
_SUBLANE = 8


# ---------------------------------------------------------------------------
# Kernels
# ---------------------------------------------------------------------------
def _fused_kernel(x0_ref, xi_ref, w_ref, b_ref, out_ref):
    # x0_ref / xi_ref / out_ref: (tb, D); w_ref / b_ref: (1, D)
    # Row dot with W accumulated in f32 (VPU multiply + XLU lane reduce; no MXU
    # - an output width of 1 would waste the systolic array).
    s = jnp.sum(xi_ref[...].astype(jnp.float32) * w_ref[...].astype(jnp.float32),
                axis=-1, keepdims=True)                                 # (tb, 1) f32
    out = s * x0_ref[...].astype(jnp.float32) + b_ref[...].astype(jnp.float32)
    out_ref[...] = out.astype(out_ref.dtype)


def _rowdot_kernel(xi_ref, w_ref, s_ref):
    # Wide-D pass 1: xi_ref (tb, td); w_ref (1, td); s_ref (tb, 1) f32.
    # The output block index is constant over the feature axis, so s_ref stays
    # resident in VMEM and acts as the accumulator.
    @pl.when(pl.program_id(1) == 0)
    def _():
        s_ref[...] = jnp.zeros_like(s_ref)

    s_ref[...] += jnp.sum(xi_ref[...].astype(jnp.float32) *
                          w_ref[...].astype(jnp.float32),
                          axis=-1, keepdims=True)


def _apply_kernel(s_ref, x0_ref, b_ref, out_ref):
    # Wide-D pass 2: s_ref (tb, 1) f32; x0_ref / out_ref (tb, td); b_ref (1, td)
    out = s_ref[...] * x0_ref[...].astype(jnp.float32) + b_ref[...].astype(jnp.float32)
    out_ref[...] = out.astype(out_ref.dtype)


# ---------------------------------------------------------------------------
# Wrapper
# ---------------------------------------------------------------------------
def _cdiv(a, b):
    return -(-a // b)


def _round_up(a, m):
    return _cdiv(a, m) * m


def _pick_tb(batch, row_bytes, tb_max, budget, target_steps=8):
    """Batch-tile rows: fit the VMEM budget, keep >= target_steps grid steps."""
    tb = max(1, budget // max(row_bytes, 1))
    tb = min(tb, tb_max)
    # Keep the parallel grid axis long enough to shard across v7x's 2 TCs and
    # to keep the double-buffer pipeline overlapping.
    tb = min(tb, _round_up(_cdiv(batch, target_steps), _SUBLANE))
    tb = max(_SUBLANE, (tb // _SUBLANE) * _SUBLANE)
    if tb >= batch:
        tb = batch  # single (full-dim) block: always a legal block shape
    return tb


def cross_interaction_layer(x0, xi, weight, bias, *,
                            tb_max=1024,
                            vmem_budget_bytes=24 * 1024 * 1024,
                            block_d=None):
    """X_0, X_i: (B, D). weight: (1, D) or (D,). bias: (D,). Returns (B, D)."""
    B, D = x0.shape
    out_dtype = x0.dtype
    itemsize = jnp.dtype(out_dtype).itemsize

    w = weight.reshape(1, D)   # keep native (f32) param dtype: no double rounding
    b = bias.reshape(1, D)
    p_itemsize = jnp.dtype(w.dtype).itemsize + jnp.dtype(b.dtype).itemsize

    # Per-batch-row bytes of the fused (full-D block) path: double-buffered
    # x0/xi/out tiles plus in-kernel f32 temporaries.
    fused_row_bytes = 2 * 3 * D * itemsize + 3 * D * 4
    min_rows = max(1, min(_SUBLANE, B))
    use_fused = block_d is None and fused_row_bytes * min_rows <= vmem_budget_bytes

    if use_fused:
        tb = _pick_tb(B, fused_row_bytes, tb_max, vmem_budget_bytes)
        grid = (_cdiv(B, tb),)
        working_set = (2 * 3 * tb * D * itemsize   # pipelined x0 / xi / out buffers
                       + 2 * D * p_itemsize        # resident W / bias
                       + 3 * tb * D * 4)           # f32 temporaries
        vmem_limit = int(max(working_set + (4 << 20), 16 << 20))
        cost = pl.CostEstimate(
            flops=3 * B * D, transcendentals=0,
            bytes_accessed=3 * B * D * itemsize + D * p_itemsize)

        return pl.pallas_call(
            _fused_kernel,
            out_shape=jax.ShapeDtypeStruct((B, D), out_dtype),
            grid_spec=pl.GridSpec(
                grid=grid,
                in_specs=[
                    pl.BlockSpec((tb, D), lambda i: (i, 0)),   # x0 tile
                    pl.BlockSpec((tb, D), lambda i: (i, 0)),   # xi tile
                    pl.BlockSpec((1, D), lambda i: (0, 0)),    # W (resident)
                    pl.BlockSpec((1, D), lambda i: (0, 0)),    # bias (resident)
                ],
                out_specs=pl.BlockSpec((tb, D), lambda i: (i, 0)),
            ),
            compiler_params=pltpu.CompilerParams(
                dimension_semantics=("parallel",),
                vmem_limit_bytes=vmem_limit,
            ),
            cost_estimate=cost,
        )(x0, xi, w, b)

    # ---- Wide-feature fallback: D-tiled, two passes ----
    if block_d is None:
        block_d = 512
    td = max(_LANE, (min(block_d, D) // _LANE) * _LANE)
    if td >= D:
        td = D
    nd = _cdiv(D, td)

    wide_row_bytes = 2 * 2 * td * itemsize + 2 * td * 4 + 8
    tb = _pick_tb(B, wide_row_bytes, tb_max, vmem_budget_bytes)
    nb = _cdiv(B, tb)
    working_set = (2 * 2 * tb * td * itemsize + 2 * td * p_itemsize
                   + 2 * tb * td * 4 + 2 * tb * 4)
    vmem_limit = int(max(working_set + (4 << 20), 16 << 20))

    # Pass 1: s = X_i @ W^T, f32 accumulation over feature tiles (axis last,
    # "arbitrary"); output block resident across the reduction axis.
    s = pl.pallas_call(
        _rowdot_kernel,
        out_shape=jax.ShapeDtypeStruct((B, 1), jnp.float32),
        grid_spec=pl.GridSpec(
            grid=(nb, nd),
            in_specs=[
                pl.BlockSpec((tb, td), lambda i, j: (i, j)),   # xi tile
                pl.BlockSpec((1, td), lambda i, j: (0, j)),    # W tile
            ],
            out_specs=pl.BlockSpec((tb, 1), lambda i, j: (i, 0)),
        ),
        compiler_params=pltpu.CompilerParams(
            dimension_semantics=("parallel", "arbitrary"),
            vmem_limit_bytes=vmem_limit,
        ),
        cost_estimate=pl.CostEstimate(
            flops=2 * B * D, transcendentals=0,
            bytes_accessed=B * D * itemsize + B * 4 + D * p_itemsize),
    )(xi, w)

    # Pass 2: out = s * X_0 + bias (fully parallel).
    return pl.pallas_call(
        _apply_kernel,
        out_shape=jax.ShapeDtypeStruct((B, D), out_dtype),
        grid_spec=pl.GridSpec(
            grid=(nb, nd),
            in_specs=[
                pl.BlockSpec((tb, 1), lambda i, j: (i, 0)),    # per-row scale s
                pl.BlockSpec((tb, td), lambda i, j: (i, j)),   # x0 tile
                pl.BlockSpec((1, td), lambda i, j: (0, j)),    # bias tile
            ],
            out_specs=pl.BlockSpec((tb, td), lambda i, j: (i, j)),
        ),
        compiler_params=pltpu.CompilerParams(
            dimension_semantics=("parallel", "parallel"),
            vmem_limit_bytes=vmem_limit,
        ),
        cost_estimate=pl.CostEstimate(
            flops=2 * B * D, transcendentals=0,
            bytes_accessed=2 * B * D * itemsize + B * 4 + D * p_itemsize),
    )(s, x0, b)


def _reference(x0, xi, weight, bias):
    s = xi @ weight.reshape(-1, 1)               # (B, 1)
    return s * x0 + bias.reshape(1, -1)


if __name__ == "__main__":
    key = jax.random.PRNGKey(0)
    k0, k1, k2, k3 = jax.random.split(key, 4)

    # Small shapes matching the module: batch=8, input_dim=32.
    B, D = 8, 32
    x0 = jax.random.normal(k0, (B, D), dtype=jnp.float32)
    xi = jax.random.normal(k1, (B, D), dtype=jnp.float32)
    weight = jax.random.normal(k2, (1, D), dtype=jnp.float32) * 0.1
    bias = jax.random.normal(k3, (D,), dtype=jnp.float32) * 0.01

    out = jax.block_until_ready(cross_interaction_layer(x0, xi, weight, bias))
    ref = _reference(x0, xi, weight, bias)
    assert out.shape == (B, D)
    assert jnp.allclose(out, ref, atol=1e-5, rtol=1e-5)

    # Also exercise the wide-feature (D-tiled, two-pass) fallback path, with a
    # ragged batch so the masked partial blocks are covered too.
    B2, D2 = 12, 256
    x0w = jax.random.normal(k0, (B2, D2), dtype=jnp.float32)
    xiw = jax.random.normal(k1, (B2, D2), dtype=jnp.float32)
    ww = jax.random.normal(k2, (1, D2), dtype=jnp.float32) * 0.1
    bw = jax.random.normal(k3, (D2,), dtype=jnp.float32) * 0.01

    outw = jax.block_until_ready(
        cross_interaction_layer(x0w, xiw, ww, bw, block_d=128))
    refw = _reference(x0w, xiw, ww, bw)
    assert outw.shape == (B2, D2)
    assert jnp.allclose(outw, refw, atol=1e-4, rtol=1e-4)

    print("KERNEL_OK")
</pallas_src>

<mosaic_0001>
module attributes {stable_mosaic.version = 11 : i64} {
  func.func @_fused_kernel(%arg0: i32, %arg1: memref<8x32xf32, #tpu.memory_space<vmem>>, %arg2: memref<8x32xf32, #tpu.memory_space<vmem>>, %arg3: memref<1x32xf32, #tpu.memory_space<vmem>>, %arg4: memref<1x32xf32, #tpu.memory_space<vmem>>, %arg5: memref<8x32xf32, #tpu.memory_space<vmem>>) attributes {dimension_semantics = [#tpu.dimension_semantics<parallel>], iteration_bounds = array<i64: 1>, scalar_prefetch = 0 : i64, scratch_operands = 0 : i64, tpu.core_type = #tpu.core_type<tc>, window_params = [{transform_indices = @transform_0, window_bounds = array<i64: 8, 32>}, {transform_indices = @transform_1, window_bounds = array<i64: 8, 32>}, {pipeline_mode = #tpu.pipeline_mode<synchronous>, transform_indices = @transform_2, window_bounds = array<i64: 1, 32>}, {pipeline_mode = #tpu.pipeline_mode<synchronous>, transform_indices = @transform_3, window_bounds = array<i64: 1, 32>}, {transform_indices = @transform_4, window_bounds = array<i64: 8, 32>}]} {
    %c0 = arith.constant 0 : index
    %c0_0 = arith.constant 0 : index
    %0 = vector.load %arg2[%c0, %c0_0] : memref<8x32xf32, #tpu.memory_space<vmem>>, vector<8x32xf32>
    %c0_1 = arith.constant 0 : index
    %c0_2 = arith.constant 0 : index
    %1 = vector.load %arg3[%c0_1, %c0_2] : memref<1x32xf32, #tpu.memory_space<vmem>>, vector<1x32xf32>
    %2 = vector.broadcast %1 : vector<1x32xf32> to vector<8x32xf32>
    %3 = arith.mulf %0, %2 : vector<8x32xf32>
    %cst = arith.constant dense<0.000000e+00> : vector<8xf32>
    %4 = vector.multi_reduction <add>, %3, %cst [1] : vector<8x32xf32> to vector<8xf32>
    %5 = vector.shape_cast %4 : vector<8xf32> to vector<8x1xf32>
    %c0_3 = arith.constant 0 : index
    %c0_4 = arith.constant 0 : index
    %6 = vector.load %arg1[%c0_3, %c0_4] : memref<8x32xf32, #tpu.memory_space<vmem>>, vector<8x32xf32>
    %7 = vector.broadcast %5 : vector<8x1xf32> to vector<8x32xf32>
    %8 = arith.mulf %7, %6 : vector<8x32xf32>
    %c0_5 = arith.constant 0 : index
    %c0_6 = arith.constant 0 : index
    %9 = vector.load %arg4[%c0_5, %c0_6] : memref<1x32xf32, #tpu.memory_space<vmem>>, vector<1x32xf32>
    %10 = vector.broadcast %9 : vector<1x32xf32> to vector<8x32xf32>
    %11 = arith.addf %8, %10 : vector<8x32xf32>
    %c0_7 = arith.constant 0 : index
    %c0_8 = arith.constant 0 : index
    %12 = vector.load %arg5[%c0_7, %c0_8] : memref<8x32xf32, #tpu.memory_space<vmem>>, vector<8x32xf32>
    tpu.vector_store %arg5[%c0_7, %c0_8], %11 {strides = array<i32>} : memref<8x32xf32, #tpu.memory_space<vmem>>, vector<8x32xf32>,
    return
  }
  func.func @transform_0(%arg0: i32) -> (i32, i32) {
    %c0_i32 = arith.constant 0 : i32
    %c0_i32_0 = arith.constant 0 : i32
    return %arg0, %c0_i32 : i32, i32
  }
  func.func @transform_1(%arg0: i32) -> (i32, i32) {
    %c0_i32 = arith.constant 0 : i32
    %c0_i32_0 = arith.constant 0 : i32
    return %arg0, %c0_i32 : i32, i32
  }
  func.func @transform_2(%arg0: i32) -> (i32, i32) {
    %c0_i32 = arith.constant 0 : i32
    %c0_i32_0 = arith.constant 0 : i32
    %c0_i32_1 = arith.constant 0 : i32
    return %c0_i32, %c0_i32_0 : i32, i32
  }
  func.func @transform_3(%arg0: i32) -> (i32, i32) {
    %c0_i32 = arith.constant 0 : i32
    %c0_i32_0 = arith.constant 0 : i32
    %c0_i32_1 = arith.constant 0 : i32
    return %c0_i32, %c0_i32_0 : i32, i32
  }
  func.func @transform_4(%arg0: i32) -> (i32, i32) {
    %c0_i32 = arith.constant 0 : i32
    %c0_i32_0 = arith.constant 0 : i32
    return %arg0, %c0_i32 : i32, i32
  }
}

</mosaic_0001>

<bundles_post_ra>
// kernel: tpu_custom_call.1
= control target key start
LH: loop header
LB: loop body
LE: loop exit
PB: predicated region body
PF: predicated region fallthrough
CT: control target
= control target key end

     0   :  { %9 = vsyncpa [#allocation3], 0  ;;  %s229_s0 = inlined_call_operand.hbm [shape: f32[8,32], index: 0, kind: input, shape index: {}]   ;;  %s230_s1 = inlined_call_operand.hbm [shape: f32[8,32], index: 1, kind: input, shape index: {}]   ;;  %s231_s2 = inlined_call_operand.vmem [shape: f32[1,32], index: 2, kind: input, shape index: {}]   ;;  %s232_s3 = inlined_call_operand.vmem [shape: f32[1,32], index: 3, kind: input, shape index: {}]   ;;  %s233_s4 = inlined_call_operand.hbm [shape: f32[8,32], index: 4, kind: output, shape index: {}]  }
   0x1   :  { %10 = vsyncpa [#allocation6], 0 }
   0x2   :  { %11 = vsyncpa [#allocation4], 0  ;;  %s159_s15 = smov [#allocation2]   ;;  %s160_s17 = smov [#allocation5]  }
   0x3   :  { %s18_s16 = sshll.u32 %s159_s15, 4  ;;  %s28_s18 = sshll.u32 %s160_s17, 4  ;;  %s19_s16 = int_to_ptr.vmem [resolvable:$true] %s18_s16  ;;  %s29_s18 = int_to_ptr.vmem [resolvable:$true] %s28_s18 }
   0x4   :  { %s87_s21 = scalar_lea.hbm %s229_s0, 128 }
   0x5   :  { %p88_p0 = scmp.ne.s32.totalorder %s229_s0, %s87_s21  ;;  %p91_p1 = scmp.lt.u32.totalorder %s87_s21, %s229_s0 }
   0x7   :  { %p93_p2 = pnand %p91_p1, %p88_p0 }
   0x9   :  { %96 = shalt.err (!%p93_p2)
}
   0xa   :  { %s97_s26 = scalar_lea.vmem %s19_s16, 128  ;;  %p102_p4 = scmp.lt.s32.totalorder %s19_s16, %s19_s16 }
   0xb   :  { %p98_p3 = scmp.ne.s32.totalorder %s19_s16, %s97_s26  ;;  %p103_p5 = scmp.lt.s32.totalorder %s97_s26, %s97_s26 }
   0xd   :  { %p104_p6 = por %p103_p5, %p102_p4 }
   0xf   :  { %p105_p7 = pnand %p104_p6, %p98_p3 }
  0x11   :  { %108 = shalt.err (!%p105_p7)
}
  0x12   :  { %21 = dma.hbm_to_vmem [thread:$0]  %s229_s0, 128, %s19_s16, [#allocation3]  }
  0x13   :  { %s109_s5 = scalar_lea.hbm %s230_s1, 128 }
  0x14   :  { %p110_p8 = scmp.ne.s32.totalorder %s230_s1, %s109_s5  ;;  %p113_p9 = scmp.lt.u32.totalorder %s109_s5, %s230_s1 }
  0x16   :  { %p115_p10 = pnand %p113_p9, %p110_p8 }
  0x18   :  { %118 = shalt.err (!%p115_p10)
}
  0x19   :  { %s119_s10 = scalar_lea.vmem %s29_s18, 128  ;;  %p124_p12 = scmp.lt.s32.totalorder %s29_s18, %s29_s18 }
  0x1a   :  { %p120_p11 = scmp.ne.s32.totalorder %s29_s18, %s119_s10  ;;  %p125_p13 = scmp.lt.s32.totalorder %s119_s10, %s119_s10 }
  0x1c   :  { %p126_p0 = por %p125_p13, %p124_p12 }
  0x1e   :  { %p127_p1 = pnand %p126_p0, %p120_p11 }
  0x20   :  { %130 = shalt.err (!%p127_p1)
}
  0x21   :  { %31 = dma.hbm_to_vmem [thread:$0]  %s230_s1, 128, %s29_s18, [#allocation6]  }
  0x22   :  { %153 = dma.done.wait [#allocation3], 128  }
  0x23   :  { %154 = vsyncadd [#allocation3], 4294967168 }
  0x24   :  { %155 = dma.done.wait [#allocation6], 128  }
  0x25   :  { %156 = vsyncadd [#allocation6], 4294967168  ;;  %v42_v0 = vld [vmem:[#allocation5] sm:$0xff]  ;;  %v82_v1 = vld [vmem:[%s231_s2] ss:$0 sm:$0xff]  ;;  %vm51_vm0 = vcmask 261120  }
  0x26   :  { %v50_v2 = vmul.f32 %v82_v1, %v42_v0  ;;  %v55_v4 = vld [vmem:[#allocation2] sm:$0xff]  ;;  %s161_s1 = smov [#allocation7]  }
  0x27   :  { %v83_v6 = vld [vmem:[%s232_s3] ss:$0 sm:$0xff]  ;;  %s72_s16 = sshll.u32 %s161_s1, 4  ;;  %s73_s16 = int_to_ptr.vmem [resolvable:$true] %s72_s16 }
  0x28   :  { %v52_v3 = vsel %vm51_vm0, %v50_v2, 0.0  ;;  %s131_s17 = scalar_lea.vmem %s73_s16, 128  ;;  %p136_p3 = scmp.lt.s32.totalorder %s73_s16, %s73_s16 }
  0x29   :  { %53 = vadd.xlane.f32.xlu0 %v52_v3  ;;  %p132_p2 = scmp.ne.s32.totalorder %s73_s16, %s131_s17  ;;  %p137_p4 = scmp.lt.s32.totalorder %s131_s17, %s131_s17 }
  0x2b   :  { %p138_p5 = por %p137_p4, %p136_p3 }
  0x2d   :  { %p139_p6 = pnand %p138_p5, %p132_p2 }
  0xb6   :  { %v54_v5 = vpop.xlane.xlu0 %53 }
  0xb7   :  { %v56_v7 = vmul.f32 %v55_v4, %v54_v5 }
  0xb9   :  { %v64_v8 = vadd.f32 %v83_v6, %v56_v7 }
  0xbb   :  { %65 = vst.msk [vmem:[#allocation7] sm:$0xff] %vm51_vm0, %v64_v8 }
  0xbc   :  { %142 = shalt.err (!%p139_p6)
}
  0xbd   :  { %s143_s19 = scalar_lea.hbm %s233_s4, 128 }
  0xbe   :  { %p144_p7 = scmp.ne.s32.totalorder %s233_s4, %s143_s19  ;;  %p147_p8 = scmp.lt.u32.totalorder %s143_s19, %s233_s4 }
  0xc0   :  { %p149_p9 = pnand %p147_p8, %p144_p7 }
  0xc2   :  { %152 = shalt.err (!%p149_p9)
}
  0xc3   :  { %75 = dma.vmem_to_hbm [thread:$0]  %s73_s16, 128, %s233_s4, [#allocation4]  }
  0xc4   :  { %157 = dma.done.wait [#allocation4], 128  }
  0xc5   :  { %158 = vsyncadd [#allocation4], 4294967168 }
  0xc6   :  { %79 = vsyncpa [#allocation3], 1 }
  0xc7   :  { %80 = vsyncpa [#allocation6], 1 }
  0xc8   :  { %81 = vsyncpa [#allocation4], 1 }

</bundles_post_ra>
